<compile_context>
chip_gen: v6e
topology: v6e:2x2x1
jax: 0.10.0
libtpu: 0.0.40
codegen_flags: <defaults>
</compile_context>

<pallas_src>
import functools

import jax
import jax.numpy as jnp
import numpy as np
from jax.experimental import pallas as pl
from jax.experimental.pallas import tpu as pltpu


_TILE_TARGET_BYTES = 8 * 1024 * 1024   # ~8 MiB of x per row tile
_TN_HARD_CAP = 65536                   # sanity cap on rows per tile


def _round_up(v, m):
    return (v + m - 1) // m * m


def _vmem_capacity_bytes():
    """Physical VMEM per TensorCore; conservative fallback if unqueryable."""
    try:
        info = pltpu.get_tpu_info()
        cap = getattr(info, "vmem_capacity_bytes", None)
        if cap:
            return int(cap)
    except Exception:
        pass
    return 64 * 1024 * 1024  # v7x-sized conservative default


# ---------------------------------------------------------------------------
# Pass 1: per-slice partial reduction  sum(x), sum(x^2), counts  per graph.
# Grid = (n_slices, tiles_per_slice); slice axis is "parallel" (v7x 2-TC),
# tile axis is "arbitrary" (sequential accumulation into the output block).
# ---------------------------------------------------------------------------
def _reduce_kernel(batch_ref, x_ref, sum_ref, sq_ref, cnt_ref, *,
                   num_graphs, num_rows, tile_rows):
    i = pl.program_id(1)

    @pl.when(i == 0)
    def _():
        sum_ref[...] = jnp.zeros_like(sum_ref)
        sq_ref[...] = jnp.zeros_like(sq_ref)
        cnt_ref[...] = jnp.zeros_like(cnt_ref)

    B = num_graphs
    TN = tile_rows
    # Global tile index (unclamped) -> first global row covered by this step.
    tile_idx = pl.program_id(0) * pl.num_programs(1) + i
    row0 = tile_idx * TN

    ids = batch_ref[...]                                          # (1, TN) i32
    col = jax.lax.broadcasted_iota(jnp.int32, (1, TN), 1)
    valid_col = (row0 + col) < num_rows                           # (1, TN)
    gid = jax.lax.broadcasted_iota(jnp.int32, (B, TN), 0)
    # Transposed one-hot built directly in reduction orientation (no vxpose);
    # invalid (ragged / OOB) rows are masked so garbage batch ids can't
    # corrupt counts.
    hits = (ids == gid) & valid_col                               # (B, TN)
    onehot_t = hits.astype(jnp.float32)

    rows = jax.lax.broadcasted_iota(jnp.int32, (TN, 1), 0)
    valid_row = (row0 + rows) < num_rows                          # (TN, 1)
    # Zero invalid rows of x too: OOB reads are unspecified (possibly NaN/Inf)
    # and 0 * NaN = NaN would poison the matmul accumulation otherwise.
    # f32 everywhere (incl. squaring) -> no bf16 mantissa loss; the extra MXU
    # cost hides under the DMA (pass is HBM-bound).
    x = jnp.where(valid_row, x_ref[...].astype(jnp.float32), 0.0)  # (TN, C)

    sum_ref[0] += jnp.dot(onehot_t, x, preferred_element_type=jnp.float32)
    sq_ref[0] += jnp.dot(onehot_t, x * x, preferred_element_type=jnp.float32)
    cnt_ref[0] += jnp.sum(onehot_t, axis=1, keepdims=True)


# ---------------------------------------------------------------------------
# Pass 2: per-node gather + normalize.
# stats = [alpha*mean | weight*inv_std]  (B, 2C); one gather matmul per tile.
# ---------------------------------------------------------------------------
def _normalize_kernel(batch_ref, x_ref, stats_ref, bias_ref, o_ref, *,
                      num_graphs):
    TN, C = x_ref.shape
    B = num_graphs

    bvec = batch_ref[...]                                         # (TN, 1) i32
    gid = jax.lax.broadcasted_iota(jnp.int32, (TN, B), 1)
    onehot = (bvec == gid).astype(jnp.float32)                    # (TN, B)

    g = jnp.dot(onehot, stats_ref[...],
                preferred_element_type=jnp.float32)               # (TN, 2C)
    x = x_ref[...].astype(jnp.float32)
    out = (x - g[:, :C]) * g[:, C:] + bias_ref[...]
    # Rows past N in the (ragged) last tile are out-of-bounds block writes and
    # are dropped by Pallas, so no masking is needed here.
    o_ref[...] = out.astype(o_ref.dtype)


# ---------------------------------------------------------------------------
# Wrapper
# ---------------------------------------------------------------------------
def graph_norm(x, weight, bias, mean_scale, batch=None, batch_size=None,
               eps=1e-5, max_tile_rows=None):
    """Pallas GraphNorm forward. x: [N, C]; batch: [N] ints or None.

    Pass `batch_size` statically when `batch` is given — the automatic
    fallback forces a host sync + recompile per distinct graph count.
    `max_tile_rows` is an optional override of the row-tile size (testing).
    """
    N, C = x.shape
    if batch is None:
        batch = jnp.zeros((N,), dtype=jnp.int32)
        batch_size = 1
    if batch_size is None:
        # Perf note: host sync; prefer passing batch_size explicitly.
        batch_size = int(jax.device_get(jnp.max(batch))) + 1
    B = int(batch_size)
    itemsize = jnp.dtype(x.dtype).itemsize

    # --- generation-aware VMEM budget ---------------------------------------
    vmem_cap = _vmem_capacity_bytes()               # 128 MiB v5e/v6e, 64 MiB v7x
    vmem_limit = int(max(32 << 20, min(vmem_cap - (8 << 20), 96 << 20)))

    # --- row-tile selection: multiple of 128, ~8 MiB of x per tile ----------
    row_bytes = max(C * itemsize, 1)
    tn = (_TILE_TARGET_BYTES // row_bytes) // 128 * 128
    tn = max(128, min(tn, _TN_HARD_CAP))
    # Keep the (B, TN) one-hot temp modest when B is large.
    onehot_cap = max(128, ((4 << 20) // (4 * max(B, 1))) // 128 * 128)
    tn = min(tn, onehot_cap)
    tn = min(tn, _round_up(N, 128))                 # don't exceed the data
    if max_tile_rows is not None:
        tn = max(128, min(tn, (int(max_tile_rows) // 128) * 128))
    TN = int(tn)
    n_tiles = -(-N // TN)                           # cdiv

    # Leading "parallel" slice axis: lets v7x shard pass 1 across both TCs;
    # on single-TC chips the two slices just run back to back (negligible).
    n_slices = 2 if n_tiles >= 2 else 1
    tps = -(-n_tiles // n_slices)                   # tiles per slice

    batch_i32 = batch.astype(jnp.int32)
    batch_row = batch_i32.reshape(1, N)             # reduction orientation
    batch_col = batch_i32.reshape(N, 1)             # gather orientation
    w2d = weight.astype(jnp.float32).reshape(1, C)
    b2d = bias.astype(jnp.float32).reshape(1, C)
    ms2d = mean_scale.astype(jnp.float32).reshape(1, C)

    def _tile_map_x(s, i):
        return (jnp.minimum(s * tps + i, n_tiles - 1), 0)

    def _tile_map_b(s, i):
        return (0, jnp.minimum(s * tps + i, n_tiles - 1))

    # --- pass 1: tiled partial reduction -> (S, B, C)/(S, B, 1) partials ----
    psum, psq, pcnt = pl.pallas_call(
        functools.partial(_reduce_kernel, num_graphs=B, num_rows=N,
                          tile_rows=TN),
        out_shape=(
            jax.ShapeDtypeStruct((n_slices, B, C), jnp.float32),
            jax.ShapeDtypeStruct((n_slices, B, C), jnp.float32),
            jax.ShapeDtypeStruct((n_slices, B, 1), jnp.float32),
        ),
        grid=(n_slices, tps),
        in_specs=[
            pl.BlockSpec((1, TN), _tile_map_b),      # batch ids (row)
            pl.BlockSpec((TN, C), _tile_map_x),      # x tile
        ],
        out_specs=(
            pl.BlockSpec((1, B, C), lambda s, i: (s, 0, 0)),
            pl.BlockSpec((1, B, C), lambda s, i: (s, 0, 0)),
            pl.BlockSpec((1, B, 1), lambda s, i: (s, 0, 0)),
        ),
        compiler_params=pltpu.CompilerParams(
            dimension_semantics=("parallel", "arbitrary"),
            vmem_limit_bytes=vmem_limit),
        cost_estimate=pl.CostEstimate(
            flops=4 * N * B * C + 4 * N * C,
            transcendentals=0,
            bytes_accessed=N * C * itemsize + N * 4
                           + n_slices * B * (2 * C + 1) * 4),
    )(batch_row, x)

    # --- tiny finalize in plain JAX (B x C scale) ----------------------------
    cnt = jnp.maximum(jnp.sum(pcnt, axis=0), 1.0)            # (B, 1)
    mean = jnp.sum(psum, axis=0) / cnt                       # (B, C)
    ex2 = jnp.sum(psq, axis=0) / cnt                         # (B, C)
    alpha = ms2d                                             # (1, C)
    # Var[x - alpha*mean] = (E[x^2] - mean^2) + (1 - alpha)^2 * mean^2
    m2 = mean * mean
    var = jnp.maximum((ex2 - m2) + jnp.square(1.0 - alpha) * m2, 0.0)
    inv_std = jax.lax.rsqrt(var + float(eps))                # (B, C)
    # Fold mean_scale and weight into the tiny per-graph rows so pass 2 does
    # no extra parameter multiplies:  stats = [alpha*mean | weight*inv_std].
    stats = jnp.concatenate([alpha * mean, w2d * inv_std], axis=1)  # (B, 2C)

    # --- pass 2: tiled gather + normalize ------------------------------------
    out = pl.pallas_call(
        functools.partial(_normalize_kernel, num_graphs=B),
        out_shape=jax.ShapeDtypeStruct((N, C), x.dtype),
        grid=(n_tiles,),
        in_specs=[
            pl.BlockSpec((TN, 1), lambda i: (i, 0)),     # batch ids (col)
            pl.BlockSpec((TN, C), lambda i: (i, 0)),     # x tile
            pl.BlockSpec((B, 2 * C), lambda i: (0, 0)),  # fused stats
            pl.BlockSpec((1, C), lambda i: (0, 0)),      # bias (beta)
        ],
        out_specs=pl.BlockSpec((TN, C), lambda i: (i, 0)),
        compiler_params=pltpu.CompilerParams(
            dimension_semantics=("parallel",),
            vmem_limit_bytes=vmem_limit),
        cost_estimate=pl.CostEstimate(
            flops=4 * N * B * C + 3 * N * C,
            transcendentals=0,
            bytes_accessed=2 * N * C * itemsize + N * 4 + B * 2 * C * 4 + C * 4),
    )(batch_col, x, stats, b2d)

    return out


# ---------------------------------------------------------------------------
# Pure-JAX reference mirroring the PyTorch forward
# ---------------------------------------------------------------------------
def graph_norm_reference(x, weight, bias, mean_scale, batch, batch_size,
                         eps=1e-5):
    ones = jnp.ones_like(batch, dtype=jnp.float32)
    counts = jnp.maximum(jax.ops.segment_sum(ones, batch, batch_size), 1.0)
    mean = jax.ops.segment_sum(x, batch, batch_size) / counts[:, None]
    out = x - mean[batch] * mean_scale
    var = jax.ops.segment_sum(out * out, batch, batch_size) / counts[:, None]
    std = jnp.sqrt(var + eps)[batch]
    return weight * out / std + bias


if __name__ == "__main__":
    key = jax.random.PRNGKey(0)
    kx, kw, kb, km, kx2 = jax.random.split(key, 5)

    # --- test 1: two graphs, ragged single tile (N=64 < 128 rows) -----------
    N, C, B = 64, 32, 2
    x = jax.random.normal(kx, (N, C), dtype=jnp.float32)
    # Module reset_parameters gives ones/zeros/ones; perturb deterministically
    # so every term of the forward is exercised.
    weight = 1.0 + 0.1 * jax.random.normal(kw, (C,), dtype=jnp.float32)
    bias = 0.1 * jax.random.normal(kb, (C,), dtype=jnp.float32)
    mean_scale = 1.0 + 0.1 * jax.random.normal(km, (C,), dtype=jnp.float32)
    batch = jnp.concatenate([jnp.zeros((24,), jnp.int32),
                             jnp.ones((N - 24,), jnp.int32)])

    out = jax.block_until_ready(
        graph_norm(x, weight, bias, mean_scale, batch=batch, batch_size=B))
    ref = graph_norm_reference(x, weight, bias, mean_scale, batch, B)
    np.testing.assert_allclose(np.asarray(out), np.asarray(ref),
                               rtol=1e-4, atol=1e-4)

    # --- test 2: multi-tile ragged N, 3 graphs, 2-slice pass-1 path ---------
    N2, B2 = 300, 3
    x2 = 2.0 + jax.random.normal(kx2, (N2, C), dtype=jnp.float32)  # nonzero mean
    batch2 = jnp.concatenate([jnp.zeros((90,), jnp.int32),
                              jnp.ones((110,), jnp.int32),
                              jnp.full((N2 - 200,), 2, jnp.int32)])
    out2 = jax.block_until_ready(
        graph_norm(x2, weight, bias, mean_scale, batch=batch2, batch_size=B2,
                   max_tile_rows=128))
    ref2 = graph_norm_reference(x2, weight, bias, mean_scale, batch2, B2)
    np.testing.assert_allclose(np.asarray(out2), np.asarray(ref2),
                               rtol=1e-4, atol=1e-4)

    # --- test 3: batch=None path (single graph), as in the module -----------
    out1 = jax.block_until_ready(graph_norm(x, weight, bias, mean_scale))
    ref1 = graph_norm_reference(x, weight, bias, mean_scale,
                                jnp.zeros((N,), jnp.int32), 1)
    np.testing.assert_allclose(np.asarray(out1), np.asarray(ref1),
                               rtol=1e-4, atol=1e-4)

    print("KERNEL_OK")
</pallas_src>

<mosaic_0001>
module attributes {stable_mosaic.version = 11 : i64} {
  func.func @_reduce_kernel(%arg0: i32, %arg1: i32, %arg2: memref<1x128xi32, #tpu.memory_space<vmem>>, %arg3: memref<128x32xf32, #tpu.memory_space<vmem>>, %arg4: memref<1x2x32xf32, #tpu.memory_space<vmem>>, %arg5: memref<1x2x32xf32, #tpu.memory_space<vmem>>, %arg6: memref<1x2x1xf32, #tpu.memory_space<vmem>>) attributes {dimension_semantics = [#tpu.dimension_semantics<parallel>, #tpu.dimension_semantics<arbitrary>], iteration_bounds = array<i64: 1, 1>, scalar_prefetch = 0 : i64, scratch_operands = 0 : i64, tpu.core_type = #tpu.core_type<tc>, window_params = [{transform_indices = @transform_0, window_bounds = array<i64: 1, 128>}, {transform_indices = @transform_1, window_bounds = array<i64: 128, 32>}, {transform_indices = @transform_2, window_bounds = array<i64: 1, 2, 32>}, {transform_indices = @transform_3, window_bounds = array<i64: 1, 2, 32>}, {transform_indices = @transform_4, window_bounds = array<i64: 1, 2, 1>}]} {
    %c0_i32 = arith.constant 0 : i32
    %0 = arith.cmpi eq, %arg1, %c0_i32 : i32
    %1 = arith.extui %0 : i1 to i32
    %c0_i32_0 = arith.constant 0 : i32
    %2 = arith.cmpi ne, %1, %c0_i32_0 : i32
    scf.if %2 {
      %cst_26 = arith.constant 0.000000e+00 : f32
      %52 = vector.broadcast %cst_26 : f32 to vector<1x2x32xf32>
      %c0_27 = arith.constant 0 : index
      %c0_28 = arith.constant 0 : index
      %c0_29 = arith.constant 0 : index
      %53 = vector.load %arg4[%c0_27, %c0_28, %c0_29] : memref<1x2x32xf32, #tpu.memory_space<vmem>>, vector<1x2x32xf32>
      tpu.vector_store %arg4[%c0_27, %c0_28, %c0_29], %52 {strides = array<i32>} : memref<1x2x32xf32, #tpu.memory_space<vmem>>, vector<1x2x32xf32>,
      %cst_30 = arith.constant 0.000000e+00 : f32
      %54 = vector.broadcast %cst_30 : f32 to vector<1x2x32xf32>
      %c0_31 = arith.constant 0 : index
      %c0_32 = arith.constant 0 : index
      %c0_33 = arith.constant 0 : index
      %55 = vector.load %arg5[%c0_31, %c0_32, %c0_33] : memref<1x2x32xf32, #tpu.memory_space<vmem>>, vector<1x2x32xf32>
      tpu.vector_store %arg5[%c0_31, %c0_32, %c0_33], %54 {strides = array<i32>} : memref<1x2x32xf32, #tpu.memory_space<vmem>>, vector<1x2x32xf32>,
      %cst_34 = arith.constant 0.000000e+00 : f32
      %56 = vector.broadcast %cst_34 : f32 to vector<1x2x1xf32>
      %c0_35 = arith.constant 0 : index
      %c0_36 = arith.constant 0 : index
      %c0_37 = arith.constant 0 : index
      %57 = vector.load %arg6[%c0_35, %c0_36, %c0_37] : memref<1x2x1xf32, #tpu.memory_space<vmem>>, vector<1x2x1xf32>
      tpu.vector_store %arg6[%c0_35, %c0_36, %c0_37], %56 {strides = array<i32>} : memref<1x2x1xf32, #tpu.memory_space<vmem>>, vector<1x2x1xf32>,
    } else {
    }
    %c1_i32 = arith.constant 1 : i32
    %3 = arith.muli %arg0, %c1_i32 : i32
    %4 = arith.addi %3, %arg1 : i32
    %c128_i32 = arith.constant 128 : i32
    %5 = arith.muli %4, %c128_i32 : i32
    %c0 = arith.constant 0 : index
    %c0_1 = arith.constant 0 : index
    %6 = vector.load %arg2[%c0, %c0_1] : memref<1x128xi32, #tpu.memory_space<vmem>>, vector<1x128xi32>
    %7 = tpu.iota {dimensions = array<i32: 1>} : vector<1x128xi32>
    %8 = vector.broadcast %5 : i32 to vector<1x128xi32>
    %9 = arith.addi %8, %7 : vector<1x128xi32>
    %c64_i32 = arith.constant 64 : i32
    %10 = vector.broadcast %c64_i32 : i32 to vector<1x128xi32>
    %11 = arith.cmpi slt, %9, %10 : vector<1x128xi32>
    %12 = tpu.iota {dimensions = array<i32: 0>} : vector<2x128xi32>
    %13 = vector.broadcast %6 : vector<1x128xi32> to vector<2x128xi32>
    %14 = arith.cmpi eq, %13, %12 : vector<2x128xi32>
    %15 = vector.broadcast %11 : vector<1x128xi1> to vector<2x128xi1>
    %16 = arith.andi %14, %15 : vector<2x128xi1>
    %17 = arith.extui %16 : vector<2x128xi1> to vector<2x128xi32>
    %18 = arith.sitofp %17 : vector<2x128xi32> to vector<2x128xf32>
    %19 = tpu.iota {dimensions = array<i32: 0>} : vector<128x1xi32>
    %20 = vector.broadcast %5 : i32 to vector<128x1xi32>
    %21 = arith.addi %20, %19 : vector<128x1xi32>
    %c64_i32_2 = arith.constant 64 : i32
    %22 = vector.broadcast %c64_i32_2 : i32 to vector<128x1xi32>
    %23 = arith.cmpi slt, %21, %22 : vector<128x1xi32>
    %c0_3 = arith.constant 0 : index
    %c0_4 = arith.constant 0 : index
    %24 = vector.load %arg3[%c0_3, %c0_4] : memref<128x32xf32, #tpu.memory_space<vmem>>, vector<128x32xf32>
    %cst = arith.constant 0.000000e+00 : f32
    %25 = vector.shape_cast %23 : vector<128x1xi1> to vector<128x1xi1>
    %26 = vector.broadcast %25 : vector<128x1xi1> to vector<128x32xi1>
    %27 = vector.broadcast %cst : f32 to vector<128x32xf32>
    %28 = arith.select %26, %24, %27 : vector<128x32xi1>, vector<128x32xf32>
    %c0_5 = arith.constant 0 : index
    %c0_6 = arith.constant 0 : index
    %c0_7 = arith.constant 0 : index
    %29 = vector.load %arg4[%c0_5, %c0_6, %c0_7] : memref<1x2x32xf32, #tpu.memory_space<vmem>>, vector<1x2x32xf32>
    %30 = vector.shape_cast %29 : vector<1x2x32xf32> to vector<2x32xf32>
    %cst_8 = arith.constant dense<0.000000e+00> : vector<2x32xf32>
    %31 = tpu.matmul %18, %28, %cst_8 {dimension_numbers = #tpu.dot_dimension_numbers<[1], [0], [0], [1], [0, 0, 1, 1], [], []>} : vector<2x128xf32>, vector<128x32xf32>, vector<2x32xf32> -> vector<2x32xf32>
    %32 = arith.addf %30, %31 : vector<2x32xf32>
    %c0_9 = arith.constant 0 : index
    %c0_10 = arith.constant 0 : index
    %c0_11 = arith.constant 0 : index
    %33 = vector.load %arg4[%c0_9, %c0_10, %c0_11] : memref<1x2x32xf32, #tpu.memory_space<vmem>>, vector<1x2x32xf32>
    %34 = vector.shape_cast %33 : vector<1x2x32xf32> to vector<2x32xf32>
    %35 = vector.shape_cast %32 : vector<2x32xf32> to vector<1x2x32xf32>
    tpu.vector_store %arg4[%c0_9, %c0_10, %c0_11], %35 {strides = array<i32>} : memref<1x2x32xf32, #tpu.memory_space<vmem>>, vector<1x2x32xf32>,
    %c0_12 = arith.constant 0 : index
    %c0_13 = arith.constant 0 : index
    %c0_14 = arith.constant 0 : index
    %36 = vector.load %arg5[%c0_12, %c0_13, %c0_14] : memref<1x2x32xf32, #tpu.memory_space<vmem>>, vector<1x2x32xf32>
    %37 = vector.shape_cast %36 : vector<1x2x32xf32> to vector<2x32xf32>
    %38 = arith.mulf %28, %28 : vector<128x32xf32>
    %cst_15 = arith.constant dense<0.000000e+00> : vector<2x32xf32>
    %39 = tpu.matmul %18, %38, %cst_15 {dimension_numbers = #tpu.dot_dimension_numbers<[1], [0], [0], [1], [0, 0, 1, 1], [], []>} : vector<2x128xf32>, vector<128x32xf32>, vector<2x32xf32> -> vector<2x32xf32>
    %40 = arith.addf %37, %39 : vector<2x32xf32>
    %c0_16 = arith.constant 0 : index
    %c0_17 = arith.constant 0 : index
    %c0_18 = arith.constant 0 : index
    %41 = vector.load %arg5[%c0_16, %c0_17, %c0_18] : memref<1x2x32xf32, #tpu.memory_space<vmem>>, vector<1x2x32xf32>
    %42 = vector.shape_cast %41 : vector<1x2x32xf32> to vector<2x32xf32>
    %43 = vector.shape_cast %40 : vector<2x32xf32> to vector<1x2x32xf32>
    tpu.vector_store %arg5[%c0_16, %c0_17, %c0_18], %43 {strides = array<i32>} : memref<1x2x32xf32, #tpu.memory_space<vmem>>, vector<1x2x32xf32>,
    %c0_19 = arith.constant 0 : index
    %c0_20 = arith.constant 0 : index
    %c0_21 = arith.constant 0 : index
    %44 = vector.load %arg6[%c0_19, %c0_20, %c0_21] : memref<1x2x1xf32, #tpu.memory_space<vmem>>, vector<1x2x1xf32>
    %45 = vector.shape_cast %44 : vector<1x2x1xf32> to vector<2x1xf32>
    %cst_22 = arith.constant dense<0.000000e+00> : vector<2xf32>
    %46 = vector.multi_reduction <add>, %18, %cst_22 [1] : vector<2x128xf32> to vector<2xf32>
    %47 = vector.shape_cast %46 : vector<2xf32> to vector<2x1xf32>
    %48 = arith.addf %45, %47 : vector<2x1xf32>
    %c0_23 = arith.constant 0 : index
    %c0_24 = arith.constant 0 : index
    %c0_25 = arith.constant 0 : index
    %49 = vector.load %arg6[%c0_23, %c0_24, %c0_25] : memref<1x2x1xf32, #tpu.memory_space<vmem>>, vector<1x2x1xf32>
    %50 = vector.shape_cast %49 : vector<1x2x1xf32> to vector<2x1xf32>
    %51 = vector.shape_cast %48 : vector<2x1xf32> to vector<1x2x1xf32>
    tpu.vector_store %arg6[%c0_23, %c0_24, %c0_25], %51 {strides = array<i32>} : memref<1x2x1xf32, #tpu.memory_space<vmem>>, vector<1x2x1xf32>,
    return
  }
  func.func @transform_0(%arg0: i32, %arg1: i32) -> (i32, i32) {
    %c1_i32 = arith.constant 1 : i32
    %0 = arith.muli %arg0, %c1_i32 : i32
    %1 = arith.addi %0, %arg1 : i32
    %c0_i32 = arith.constant 0 : i32
    %2 = arith.minsi %1, %c0_i32 : i32
    %c0_i32_0 = arith.constant 0 : i32
    %c0_i32_1 = arith.constant 0 : i32
    return %c0_i32_0, %2 : i32, i32
  }
  func.func @transform_1(%arg0: i32, %arg1: i32) -> (i32, i32) {
    %c1_i32 = arith.constant 1 : i32
    %0 = arith.muli %arg0, %c1_i32 : i32
    %1 = arith.addi %0, %arg1 : i32
    %c0_i32 = arith.constant 0 : i32
    %2 = arith.minsi %1, %c0_i32 : i32
    %c0_i32_0 = arith.constant 0 : i32
    %c0_i32_1 = arith.constant 0 : i32
    return %2, %c0_i32_0 : i32, i32
  }
  func.func @transform_2(%arg0: i32, %arg1: i32) -> (i32, i32, i32) {
    %c0_i32 = arith.constant 0 : i32
    %c0_i32_0 = arith.constant 0 : i32
    %c0_i32_1 = arith.constant 0 : i32
    return %arg0, %c0_i32, %c0_i32_0 : i32, i32, i32
  }
  func.func @transform_3(%arg0: i32, %arg1: i32) -> (i32, i32, i32) {
    %c0_i32 = arith.constant 0 : i32
    %c0_i32_0 = arith.constant 0 : i32
    %c0_i32_1 = arith.constant 0 : i32
    return %arg0, %c0_i32, %c0_i32_0 : i32, i32, i32
  }
  func.func @transform_4(%arg0: i32, %arg1: i32) -> (i32, i32, i32) {
    %c0_i32 = arith.constant 0 : i32
    %c0_i32_0 = arith.constant 0 : i32
    %c0_i32_1 = arith.constant 0 : i32
    return %arg0, %c0_i32, %c0_i32_0 : i32, i32, i32
  }
}

</mosaic_0001>

<bundles_post_ra>
// kernel: tpu_custom_call.1
= control target key start
LH: loop header
LB: loop body
LE: loop exit
PB: predicated region body
PF: predicated region fallthrough
CT: control target
= control target key end

     0   :  { %10 = vsyncpa [#allocation3], 0  ;;  %v94_v3 = vlaneseq  ;;  %v543_v4 = vmov 0.0   ;;  %vm544_vm0 = vmmov 0   ;;  %vm86_vm1 = vcmask 254976   ;;  %s653_s0 = inlined_call_operand.vmem [shape: s32[1,64], index: 0, kind: input, shape index: {}]   ;;  %s654_s1 = inlined_call_operand.vmem [shape: f32[64,32], index: 1, kind: input, shape index: {}]   ;;  %s655_s2 = inlined_call_operand.hbm [shape: f32[1,2,32], index: 2, kind: output, shape index: {0}]   ;;  %s656_s3 = inlined_call_operand.hbm [shape: f32[1,2,32], index: 3, kind: output, shape index: {1}]   ;;  %s657_s4 = inlined_call_operand.vmem [shape: f32[1,2,1], index: 4, kind: output, shape index: {2}]  }
   0x1   :  { %v165_v0 = vld [vmem:[%s654_s1 + $0x38] sm:$0xff]  ;;  %v164_v1 = vld [vmem:[%s654_s1 + $0x30] sm:$0xff]  ;;  %v163_v2 = vld [vmem:[%s654_s1 + $0x28] sm:$0xff]  ;;  %456 = vmatprep.subr.mxu0 %v543_v4  ;;  %475 = vmatprep.subr.mxu1 %v543_v4 }
   0x2   :  { %v304_v5 = vmul.f32 %v165_v0, %v165_v0  ;;  %v303_v6 = vmul.f32 %v164_v1, %v164_v1  ;;  %457 = vmatpush3.msra.mxu0 %v165_v0  ;;  %v162_v7 = vld [vmem:[%s654_s1 + $0x20] sm:$0xff]  ;;  %472 = vmatprep.mubr.msk.f32.mxu0 %vm544_vm0, %v543_v4  ;;  %v302_v8 = vmul.f32 %v163_v2, %v163_v2 }
   0x3   :  { %458 = vmatprep.subr.mxu0 %v543_v4 }
   0x4   :  { %476 = vmatpush3.msra.mxu1 %v304_v5 }
   0x5   :  { %11 = vsyncpa [#allocation5], 0  ;;  %459 = vmatpush3.msra.mxu0 %v164_v1  ;;  %477 = vmatprep.subr.mxu1 %v543_v4  ;;  %v161_v9 = vld [vmem:[%s654_s1 + $0x18] sm:$0xff]  ;;  %v95_v10 = vand.u32 127, %v94_v3  ;;  %v100_v11 = vshrl.u32 %v94_v3, 7  ;;  %v301_v12 = vmul.f32 %v162_v7, %v162_v7  ;;  %v160_v14 = vld [vmem:[%s654_s1 + $0x10] sm:$0xff] }
   0x6   :  { %87 = vst.msk [vmem:[#allocation2] sm:$0x3] %vm86_vm1, %v543_v4  ;;  %88 = vst.msk [vmem:[#allocation4] sm:$0x3] %vm86_vm1, %v543_v4  ;;  %460 = vmatprep.subr.mxu0 %v543_v4  ;;  %478 = vmatpush3.msra.mxu1 %v303_v6  ;;  %v434_v13 = vld [vmem:[%s653_s0] ss:$0 sm:$0xff]  ;;  %v300_v15 = vmul.f32 %v161_v9, %v161_v9  ;;  %v299_v17 = vmul.f32 %v160_v14, %v160_v14 }
   0x7   :  { %461 = vmatpush3.msra.mxu0 %v163_v2  ;;  %479 = vmatprep.subr.mxu1 %v543_v4  ;;  %v159_v16 = vld [vmem:[%s654_s1 + $0x8] sm:$0xff]  ;;  %vm98_vm2 = vcmp.lt.s32.totalorder %v95_v10, 64  ;;  %vm105_vm3 = vcmp.eq.s32.totalorder %v434_v13, %v100_v11  ;;  %v158_v18 = vld [vmem:[%s654_s1] sm:$0xff]  ;;  %vm386_vm5 = vcmask 1041408   ;;  %v545_v24 = vmov 1.0   ;;  %s546_s11 = smov [#allocation2]  }
   0x8   :  { %462 = vmatprep.subr.mxu0 %v543_v4  ;;  %480 = vmatpush3.msra.mxu1 %v302_v8  ;;  %v298_v19 = vmul.f32 %v159_v16, %v159_v16  ;;  %vm617_vm4 = vmand %vm105_vm3, %vm98_vm2  ;;  %v297_v22 = vmul.f32 %v158_v18, %v158_v18  ;;  %vm89_vm6 = vcmask 1024   ;;  %s399_s12 = sshll.u32 %s546_s11, 4  ;;  %s547_s13 = smov [#allocation4]   ;;  %s400_s12 = int_to_ptr.vmem [resolvable:$true] %s399_s12 }
   0x9   :  { %463 = vmatpush3.msra.mxu0 %v162_v7  ;;  %481 = vmatprep.subr.mxu1 %v543_v4  ;;  %v435_v21 = vsel %vm617_vm4, 1.0, %v543_v4  ;;  %90 = vst.msk [vmem:[%s657_s4] sm:$0x3] %vm89_vm6, %v543_v4  ;;  %s409_s14 = sshll.u32 %s547_s13, 4  ;;  %s499_s15 = scalar_lea.vmem %s400_s12, 32  ;;  %s410_s14 = int_to_ptr.vmem [resolvable:$true] %s409_s14 }
   0xa   :  { %464 = vmatprep.subr.mxu0 %v543_v4  ;;  %482 = vmatpush3.msra.mxu1 %v301_v12  ;;  %v387_v23 = vsel %vm386_vm5, %v435_v21, 0.0  ;;  %p500_p0 = scmp.ne.s32.totalorder %s400_s12, %s499_s15  ;;  %p504_p1 = scmp.lt.s32.totalorder %s400_s12, %s400_s12 }
   0xb   :  { %465 = vmatpush3.msra.mxu0 %v161_v9  ;;  %483 = vmatprep.subr.mxu1 %v543_v4  ;;  %p505_p2 = scmp.lt.s32.totalorder %s499_s15, %s499_s15 }
   0xc   :  { %466 = vmatprep.subr.mxu0 %v543_v4  ;;  %484 = vmatpush3.msra.mxu1 %v300_v15 }
   0xd   :  { %467 = vmatpush3.msra.mxu0 %v160_v14  ;;  %485 = vmatprep.subr.mxu1 %v543_v4  ;;  %v222_v28 = vld [vmem:[#allocation2] sm:$0x3]  ;;  %v296_v30 = vld [vmem:[#allocation4] sm:$0x3]  ;;  %p506_p3 = por %p505_p2, %p504_p1 }
   0xe   :  { %468 = vmatprep.subr.mxu0 %v543_v4  ;;  %486 = vmatpush3.msra.mxu1 %v299_v17 }
   0xf   :  { %469 = vmatpush3.msra.mxu0 %v159_v16  ;;  %487 = vmatprep.subr.mxu1 %v543_v4  ;;  %p507_p4 = pnand %p506_p3, %p500_p0 }
  0x10   :  { %470 = vmatprep.subr.mxu0 %v543_v4  ;;  %488 = vmatpush3.msra.mxu1 %v298_v19  ;;  %v385_v25 = vld [vmem:[%s657_s4] sm:$0x3] }
  0x11   :  { %471 = vmatpush3.msra.mxu0 %v158_v18  ;;  %489 = vmatprep.subr.mxu1 %v543_v4 }
  0x12   :  { %473 = vmatmul.mubr.msk.f32.vlgmr.msra.gmra.mxu0 %vm617_vm4, %v545_v24  ;;  %490 = vmatpush3.msra.mxu1 %v297_v22 }
  0x13   :  { %491 = vmatprep.mubr.msk.f32.mxu1 %vm544_vm0, %v543_v4  ;;  %388 = vadd.xlane.f32.xlu0 %v387_v23 }
  0x14   :  { %492 = vmatmul.mubr.msk.f32.vlgmr.msra.gmra.mxu1 %vm617_vm4, %v545_v24 }
  0x9c   :  { %v389_v26 = vpop.xlane.xlu0 %388 }
  0x9d   :  { %v390_v27 = vadd.f32 %v389_v26, %v385_v25 }
  0x9f   :  { %392 = vst.msk [vmem:[%s657_s4] sm:$0x3] %vm89_vm6, %v390_v27 }
  0xd2   :  { %v289_v29 = vpop.f32.mrf.mxu0 }
  0xd3   :  { %v293_v31 = vadd.f32 %v289_v29, %v222_v28 }
  0xd4   :  { %v379_v32 = vpop.f32.mrf.mxu1  ;;  %v474_v33 = vpop.f32.mrf.mxu0 }
  0xd5   :  { %295 = vst.msk [vmem:[#allocation2] sm:$0x3] %vm86_vm1, %v293_v31  ;;  %v383_v34 = vadd.f32 %v379_v32, %v296_v30 }
  0xd6   :  { %v493_v35 = vpop.f32.mrf.mxu1 }
  0xd7   :  { %510 = shalt.err (!%p507_p4)
}
  0xd8   :  { %402 = dma.vmem_to_hbm [thread:$0]  %s400_s12, 32, %s655_s2, [#allocation3]   ;;  %384 = vst.msk [vmem:[#allocation4] sm:$0x3] %vm86_vm1, %v383_v34 }
  0xd9   :  { %s519_s17 = scalar_lea.vmem %s410_s14, 32  ;;  %p524_p6 = scmp.lt.s32.totalorder %s410_s14, %s410_s14 }
  0xda   :  { %p520_p5 = scmp.ne.s32.totalorder %s410_s14, %s519_s17  ;;  %p525_p7 = scmp.lt.s32.totalorder %s519_s17, %s519_s17 }
  0xdc   :  { %p526_p8 = por %p525_p7, %p524_p6 }
  0xde   :  { %p527_p9 = pnand %p526_p8, %p520_p5 }
  0xe0   :  { %530 = shalt.err (!%p527_p9)
}
  0xe1   :  { %412 = dma.vmem_to_hbm [thread:$0]  %s410_s14, 32, %s656_s3, [#allocation5]  }
  0xe2   :  { %539 = dma.done.wait [#allocation3], 32  }
  0xe3   :  { %540 = vsyncadd [#allocation3], 4294967264 }
  0xe4   :  { %541 = dma.done.wait [#allocation5], 32  }
  0xe5   :  { %542 = vsyncadd [#allocation5], 4294967264 }
  0xe6   :  { %423 = vsyncpa [#allocation3], 1 }
  0xe7   :  { %424 = vsyncpa [#allocation5], 1 }

</bundles_post_ra>
